<compile_context>
chip_gen: v7x
topology: tpu7x:2x2x1
jax: 0.10.0
libtpu: 0.0.40
codegen_flags: <defaults>
</compile_context>

<pallas_src>
import jax
import jax.numpy as jnp
from jax.experimental import pallas as pl
from jax.experimental.pallas import tpu as pltpu


def _sigmoid(v):
    # Exactly one EUP transcendental (tanh) per element + two cheap VALU ops.
    return 0.5 * jnp.tanh(0.5 * v) + 0.5


def mlp_kernel(x_ref, w1t_ref, b1t_ref, w2t_ref, b2t_ref, w3t_ref, b3t_ref,
               o_ref):
    """x_ref: (8, TB) f32 tile (batch on lanes).

    w*t_ref: (8, 8) zero-padded transposed weights, b*t_ref: (8, 1) padded
    biases, all VMEM-resident.  Each layer = one MXU matmul over the whole
    tile + one dense sigmoid.  Row 0 of the final activation is the output.
    """
    h = x_ref[...]                                             # (8, TB)
    h = _sigmoid(jnp.dot(w1t_ref[...], h,
                         preferred_element_type=jnp.float32) + b1t_ref[...])
    h = _sigmoid(jnp.dot(w2t_ref[...], h,
                         preferred_element_type=jnp.float32) + b2t_ref[...])
    h = _sigmoid(jnp.dot(w3t_ref[...], h,
                         preferred_element_type=jnp.float32) + b3t_ref[...])
    o_ref[...] = h[0:1, :].astype(o_ref.dtype)


def _round_up(n, m):
    return ((n + m - 1) // m) * m


def _pad2d(a, rows, cols):
    a = jnp.asarray(a, jnp.float32)
    r, c = a.shape
    return jnp.pad(a, ((0, rows - r), (0, cols - c)))


def mlp_forward_pallas_feature_major(xT, params, tile_b=131072):
    """Forward pass on feature-major input.  xT: (8, B) f32 -> (1, B) f32."""
    F, B = xT.shape
    assert F == 8, f"expected 8 input features, got {F}"

    # Lane-dense batch tile (multiple of 128).  Capped so that (a) large
    # batches get >= ~4 grid steps (DMA/compute overlap + dual-TC sharding on
    # v7x) and (b) the double-buffered working set (2x32B/lane in, 2x4B/lane
    # out, ~3x32B/lane intermediates) stays ~25 MiB at the 131072-lane default,
    # under the 48 MiB vmem_limit below on all generations.
    tile_b = max(128, (int(tile_b) // 128) * 128)
    tb_cap = _round_up(max(1, (B + 3) // 4), 128)   # aim for >= 4 grid steps
    tb = min(tile_b, tb_cap)
    Bp = _round_up(B, tb)

    xT = jnp.asarray(xT, jnp.float32)
    if Bp != B:                                      # ragged tail tile only
        xT = jnp.pad(xT, ((0, 0), (0, Bp - B)))

    # Transpose weights to feature-major and zero-pad every layer width to 8:
    # padded *input* columns are zero (garbage rows of the previous layer
    # contribute exactly 0) and padded *output* rows are zero (they only
    # produce inert sigmoid(0) rows) -> valid rows are exact.
    w1t = _pad2d(params["w1"].T, 8, 8)   # (6, 8) -> (8, 8)
    b1t = _pad2d(params["b1"].T, 8, 1)   # (6, 1) -> (8, 1)
    w2t = _pad2d(params["w2"].T, 8, 8)   # (4, 6) -> (8, 8)
    b2t = _pad2d(params["b2"].T, 8, 1)
    w3t = _pad2d(params["w3"].T, 8, 8)   # (1, 4) -> (8, 8)
    b3t = _pad2d(params["b3"].T, 8, 1)

    vmem = pltpu.MemorySpace.VMEM
    weight_spec = pl.BlockSpec(memory_space=vmem)    # whole array, resident

    out_t = pl.pallas_call(
        mlp_kernel,
        out_shape=jax.ShapeDtypeStruct((1, Bp), jnp.float32),
        grid=(Bp // tb,),
        in_specs=[
            pl.BlockSpec((8, tb), lambda i: (0, i), memory_space=vmem),  # x
            weight_spec, weight_spec,    # w1t, b1t
            weight_spec, weight_spec,    # w2t, b2t
            weight_spec, weight_spec,    # w3t, b3t
        ],
        out_specs=pl.BlockSpec((1, tb), lambda i: (0, i), memory_space=vmem),
        compiler_params=pltpu.CompilerParams(
            dimension_semantics=("parallel",),       # shards tiles across TCs
            vmem_limit_bytes=48 * 1024 * 1024,
        ),
    )(xT, w1t, b1t, w2t, b2t, w3t, b3t)
    return out_t[:, :B]


def mlp_forward_pallas(x, params, tile_b=131072):
    """Batch-major (B, 8) -> (B, 1) wrapper matching the PyTorch module I/O."""
    # TODO(synk): keep activations feature-major upstream to skip this
    # transpose (an extra HBM read+write of x for a bandwidth-bound op).
    yT = mlp_forward_pallas_feature_major(
        jnp.asarray(x, jnp.float32).T, params, tile_b=tile_b)
    return yT.T                                      # (B, 1)


def mlp_forward_reference(x, params):
    """Pure-JAX reference (same math as the PyTorch module)."""
    h1 = jax.nn.sigmoid(x @ params["w1"] + params["b1"])
    h2 = jax.nn.sigmoid(h1 @ params["w2"] + params["b2"])
    return jax.nn.sigmoid(h2 @ params["w3"] + params["b3"])


def mlp_forward(x, params, *, min_pallas_batch=1024, tile_b=131072):
    """Dispatcher: plain XLA for tiny batches, Pallas kernel otherwise."""
    if x.shape[0] < min_pallas_batch:
        return mlp_forward_reference(x, params)
    return mlp_forward_pallas(x, params, tile_b=tile_b)


def init_params(key):
    """Deterministic init mimicking nn.Linear's uniform(-1/sqrt(fan_in), ...).

    Weights stored as (in, out) so each layer computes sigmoid(x @ W + b),
    matching PyTorch's nn.Linear(in, out) on a (B, in) input.
    """
    dims = [(8, 6), (6, 4), (4, 1)]
    params = {}
    for i, (fan_in, fan_out) in enumerate(dims, start=1):
        key, kw, kb = jax.random.split(key, 3)
        bound = 1.0 / jnp.sqrt(jnp.float32(fan_in))
        params[f"w{i}"] = jax.random.uniform(
            kw, (fan_in, fan_out), jnp.float32, -bound, bound)
        params[f"b{i}"] = jax.random.uniform(
            kb, (1, fan_out), jnp.float32, -bound, bound)
    return params


if __name__ == "__main__":
    key = jax.random.PRNGKey(0)
    key, kx = jax.random.split(key)
    params = init_params(key)

    # Small shape consistent with the module: (B, 8) input -> (B, 1) output.
    B = 2
    x = jax.random.normal(kx, (B, 8), jnp.float32)
    y = jax.block_until_ready(mlp_forward_pallas(x, params))
    y_ref = mlp_forward_reference(x, params)
    assert y.shape == (B, 1)
    assert jnp.allclose(y, y_ref, atol=5e-3, rtol=5e-3), (
        f"max abs err {jnp.max(jnp.abs(y - y_ref))}")

    # Exercise the multi-step grid path + padded ragged tail (300 % 128 != 0).
    B2 = 300
    x2 = jax.random.normal(jax.random.PRNGKey(1), (B2, 8), jnp.float32)
    y2 = jax.block_until_ready(mlp_forward_pallas(x2, params))
    y2_ref = mlp_forward_reference(x2, params)
    assert y2.shape == (B2, 1)
    assert jnp.allclose(y2, y2_ref, atol=5e-3, rtol=5e-3), (
        f"max abs err {jnp.max(jnp.abs(y2 - y2_ref))}")

    print("KERNEL_OK")
</pallas_src>

<mosaic_0001>
module attributes {stable_mosaic.version = 11 : i64} {
  func.func @mlp_kernel(%arg0: i32, %arg1: memref<8x128xf32, #tpu.memory_space<vmem>>, %arg2: memref<8x8xf32, #tpu.memory_space<vmem>>, %arg3: memref<8x1xf32, #tpu.memory_space<vmem>>, %arg4: memref<8x8xf32, #tpu.memory_space<vmem>>, %arg5: memref<8x1xf32, #tpu.memory_space<vmem>>, %arg6: memref<8x8xf32, #tpu.memory_space<vmem>>, %arg7: memref<8x1xf32, #tpu.memory_space<vmem>>, %arg8: memref<1x128xf32, #tpu.memory_space<vmem>>) attributes {dimension_semantics = [#tpu.dimension_semantics<parallel>], iteration_bounds = array<i64: 1>, scalar_prefetch = 0 : i64, scratch_operands = 0 : i64, tpu.core_type = #tpu.core_type<tc>, window_params = [{transform_indices = @transform_0, window_bounds = array<i64: 8, 128>}, {pipeline_mode = #tpu.pipeline_mode<synchronous>, transform_indices = @transform_1, window_bounds = array<i64: 8, 8>}, {pipeline_mode = #tpu.pipeline_mode<synchronous>, transform_indices = @transform_2, window_bounds = array<i64: 8, 1>}, {pipeline_mode = #tpu.pipeline_mode<synchronous>, transform_indices = @transform_3, window_bounds = array<i64: 8, 8>}, {pipeline_mode = #tpu.pipeline_mode<synchronous>, transform_indices = @transform_4, window_bounds = array<i64: 8, 1>}, {pipeline_mode = #tpu.pipeline_mode<synchronous>, transform_indices = @transform_5, window_bounds = array<i64: 8, 8>}, {pipeline_mode = #tpu.pipeline_mode<synchronous>, transform_indices = @transform_6, window_bounds = array<i64: 8, 1>}, {transform_indices = @transform_7, window_bounds = array<i64: 1, 128>}]} {
    %c0 = arith.constant 0 : index
    %c0_0 = arith.constant 0 : index
    %0 = vector.load %arg1[%c0, %c0_0] : memref<8x128xf32, #tpu.memory_space<vmem>>, vector<8x128xf32>
    %c0_1 = arith.constant 0 : index
    %c0_2 = arith.constant 0 : index
    %1 = vector.load %arg2[%c0_1, %c0_2] : memref<8x8xf32, #tpu.memory_space<vmem>>, vector<8x8xf32>
    %cst = arith.constant dense<0.000000e+00> : vector<8x128xf32>
    %2 = tpu.matmul %1, %0, %cst {dimension_numbers = #tpu.dot_dimension_numbers<[1], [0], [0], [1], [0, 0, 1, 1], [], []>} : vector<8x8xf32>, vector<8x128xf32>, vector<8x128xf32> -> vector<8x128xf32>
    %c0_3 = arith.constant 0 : index
    %c0_4 = arith.constant 0 : index
    %3 = vector.load %arg3[%c0_3, %c0_4] : memref<8x1xf32, #tpu.memory_space<vmem>>, vector<8x1xf32>
    %4 = vector.broadcast %3 : vector<8x1xf32> to vector<8x128xf32>
    %5 = arith.addf %2, %4 : vector<8x128xf32>
    %cst_5 = arith.constant 5.000000e-01 : f32
    %6 = vector.broadcast %cst_5 : f32 to vector<8x128xf32>
    %7 = arith.mulf %6, %5 : vector<8x128xf32>
    %8 = math.tanh %7 : vector<8x128xf32>
    %cst_6 = arith.constant 5.000000e-01 : f32
    %9 = vector.broadcast %cst_6 : f32 to vector<8x128xf32>
    %10 = arith.mulf %9, %8 : vector<8x128xf32>
    %cst_7 = arith.constant 5.000000e-01 : f32
    %11 = vector.broadcast %cst_7 : f32 to vector<8x128xf32>
    %12 = arith.addf %10, %11 : vector<8x128xf32>
    %c0_8 = arith.constant 0 : index
    %c0_9 = arith.constant 0 : index
    %13 = vector.load %arg4[%c0_8, %c0_9] : memref<8x8xf32, #tpu.memory_space<vmem>>, vector<8x8xf32>
    %cst_10 = arith.constant dense<0.000000e+00> : vector<8x128xf32>
    %14 = tpu.matmul %13, %12, %cst_10 {dimension_numbers = #tpu.dot_dimension_numbers<[1], [0], [0], [1], [0, 0, 1, 1], [], []>} : vector<8x8xf32>, vector<8x128xf32>, vector<8x128xf32> -> vector<8x128xf32>
    %c0_11 = arith.constant 0 : index
    %c0_12 = arith.constant 0 : index
    %15 = vector.load %arg5[%c0_11, %c0_12] : memref<8x1xf32, #tpu.memory_space<vmem>>, vector<8x1xf32>
    %16 = vector.broadcast %15 : vector<8x1xf32> to vector<8x128xf32>
    %17 = arith.addf %14, %16 : vector<8x128xf32>
    %cst_13 = arith.constant 5.000000e-01 : f32
    %18 = vector.broadcast %cst_13 : f32 to vector<8x128xf32>
    %19 = arith.mulf %18, %17 : vector<8x128xf32>
    %20 = math.tanh %19 : vector<8x128xf32>
    %cst_14 = arith.constant 5.000000e-01 : f32
    %21 = vector.broadcast %cst_14 : f32 to vector<8x128xf32>
    %22 = arith.mulf %21, %20 : vector<8x128xf32>
    %cst_15 = arith.constant 5.000000e-01 : f32
    %23 = vector.broadcast %cst_15 : f32 to vector<8x128xf32>
    %24 = arith.addf %22, %23 : vector<8x128xf32>
    %c0_16 = arith.constant 0 : index
    %c0_17 = arith.constant 0 : index
    %25 = vector.load %arg6[%c0_16, %c0_17] : memref<8x8xf32, #tpu.memory_space<vmem>>, vector<8x8xf32>
    %cst_18 = arith.constant dense<0.000000e+00> : vector<8x128xf32>
    %26 = tpu.matmul %25, %24, %cst_18 {dimension_numbers = #tpu.dot_dimension_numbers<[1], [0], [0], [1], [0, 0, 1, 1], [], []>} : vector<8x8xf32>, vector<8x128xf32>, vector<8x128xf32> -> vector<8x128xf32>
    %c0_19 = arith.constant 0 : index
    %c0_20 = arith.constant 0 : index
    %27 = vector.load %arg7[%c0_19, %c0_20] : memref<8x1xf32, #tpu.memory_space<vmem>>, vector<8x1xf32>
    %28 = vector.broadcast %27 : vector<8x1xf32> to vector<8x128xf32>
    %29 = arith.addf %26, %28 : vector<8x128xf32>
    %cst_21 = arith.constant 5.000000e-01 : f32
    %30 = vector.broadcast %cst_21 : f32 to vector<8x128xf32>
    %31 = arith.mulf %30, %29 : vector<8x128xf32>
    %32 = math.tanh %31 : vector<8x128xf32>
    %cst_22 = arith.constant 5.000000e-01 : f32
    %33 = vector.broadcast %cst_22 : f32 to vector<8x128xf32>
    %34 = arith.mulf %33, %32 : vector<8x128xf32>
    %cst_23 = arith.constant 5.000000e-01 : f32
    %35 = vector.broadcast %cst_23 : f32 to vector<8x128xf32>
    %36 = arith.addf %34, %35 : vector<8x128xf32>
    %37 = vector.extract_strided_slice %36 {offsets = [0, 0], sizes = [1, 128], strides = [1, 1]} : vector<8x128xf32> to vector<1x128xf32>
    %c0_24 = arith.constant 0 : index
    %c0_25 = arith.constant 0 : index
    %38 = vector.load %arg8[%c0_24, %c0_25] : memref<1x128xf32, #tpu.memory_space<vmem>>, vector<1x128xf32>
    tpu.vector_store %arg8[%c0_24, %c0_25], %37 {strides = array<i32>} : memref<1x128xf32, #tpu.memory_space<vmem>>, vector<1x128xf32>,
    return
  }
  func.func @transform_0(%arg0: i32) -> (i32, i32) {
    %c0_i32 = arith.constant 0 : i32
    %c0_i32_0 = arith.constant 0 : i32
    return %c0_i32, %arg0 : i32, i32
  }
  func.func @transform_1(%arg0: i32) -> (i32, i32) {
    %c0_i32 = arith.constant 0 : i32
    %c0_i32_0 = arith.constant 0 : i32
    %c0_i32_1 = arith.constant 0 : i32
    return %c0_i32, %c0_i32_0 : i32, i32
  }
  func.func @transform_2(%arg0: i32) -> (i32, i32) {
    %c0_i32 = arith.constant 0 : i32
    %c0_i32_0 = arith.constant 0 : i32
    %c0_i32_1 = arith.constant 0 : i32
    return %c0_i32, %c0_i32_0 : i32, i32
  }
  func.func @transform_3(%arg0: i32) -> (i32, i32) {
    %c0_i32 = arith.constant 0 : i32
    %c0_i32_0 = arith.constant 0 : i32
    %c0_i32_1 = arith.constant 0 : i32
    return %c0_i32, %c0_i32_0 : i32, i32
  }
  func.func @transform_4(%arg0: i32) -> (i32, i32) {
    %c0_i32 = arith.constant 0 : i32
    %c0_i32_0 = arith.constant 0 : i32
    %c0_i32_1 = arith.constant 0 : i32
    return %c0_i32, %c0_i32_0 : i32, i32
  }
  func.func @transform_5(%arg0: i32) -> (i32, i32) {
    %c0_i32 = arith.constant 0 : i32
    %c0_i32_0 = arith.constant 0 : i32
    %c0_i32_1 = arith.constant 0 : i32
    return %c0_i32, %c0_i32_0 : i32, i32
  }
  func.func @transform_6(%arg0: i32) -> (i32, i32) {
    %c0_i32 = arith.constant 0 : i32
    %c0_i32_0 = arith.constant 0 : i32
    %c0_i32_1 = arith.constant 0 : i32
    return %c0_i32, %c0_i32_0 : i32, i32
  }
  func.func @transform_7(%arg0: i32) -> (i32, i32) {
    %c0_i32 = arith.constant 0 : i32
    %c0_i32_0 = arith.constant 0 : i32
    return %c0_i32, %arg0 : i32, i32
  }
}

</mosaic_0001>

<bundles_post_ra>
// kernel: tpu_custom_call.1
= control target key start
LH: loop header
LB: loop body
LE: loop exit
PB: predicated region body
PF: predicated region fallthrough
CT: control target
= control target key end

     0   :  { %vm35_vm0 = vcmask 64512   ;;  %v356_v2 = vmov 0.0   ;;  %vm357_vm1 = vmmov 0   ;;  %s436_s0 = inlined_call_operand.vmem [shape: f32[8,128], index: 0, kind: input, shape index: {}]   ;;  %s437_s1 = inlined_call_operand.vmem [shape: f32[8,8], index: 1, kind: input, shape index: {}]   ;;  %s438_s2 = inlined_call_operand.vmem [shape: f32[8,1], index: 2, kind: input, shape index: {}]   ;;  %s439_s3 = inlined_call_operand.vmem [shape: f32[8,8], index: 3, kind: input, shape index: {}]   ;;  %s440_s4 = inlined_call_operand.vmem [shape: f32[8,1], index: 4, kind: input, shape index: {}]   ;;  %s441_s5 = inlined_call_operand.vmem [shape: f32[8,8], index: 5, kind: input, shape index: {}]   ;;  %s442_s6 = inlined_call_operand.vmem [shape: f32[8,1], index: 6, kind: input, shape index: {}]   ;;  %s443_s7 = inlined_call_operand.hbm [shape: f32[1,128], index: 7, kind: output, shape index: {}]  }
   0x1   :  { %v27_v0 = vld [vmem:[%s436_s0] sm:$0xff]  ;;  %305 = vmatprep.subr.mxu0 %v356_v2  ;;  %307 = vmatprep.mubr.msk.f32.mxu0 %vm357_vm1, %v356_v2 }
   0x2   :  { %v28_v1 = vld [vmem:[%s437_s1] sm:$0xff] }
   0x3   :  { %v29_v3 = vld [vmem:[%s438_s2] sm:$0xff] }
   0x4   :  { %12 = vsyncpa [#allocation3], 0  ;;  %306 = vmatpush3.msra.mxu0 %v27_v0  ;;  %v358_v4 = vmov 0   ;;  %v114_v5 = vld [vmem:[%s440_s4] sm:$0xff]  ;;  %310 = vmatprep.subr.mxu1 %v356_v2 }
   0x5   :  { %324 = vset.pattern.permute.xlu0 %v358_v4  ;;  %308 = vmatmul.mubr.msk.f32.vlgmr.msra.gmra.mrb[0].mxu0 %vm35_vm0, %v28_v1  ;;  %v113_v14 = vld [vmem:[%s439_s3] sm:$0xff]  ;;  %s359_s3 = smov [#allocation2]  }
   0x6   :  { %32 = vperm.xlu0 %324, %v29_v3   ;;  %312 = vmatprep.mubr.msk.f32.mxu1 %vm357_vm1, %v356_v2  ;;  %v198_v15 = vld [vmem:[%s442_s6] sm:$0xff]  ;;  %s288_s6 = sshll.u32 %s359_s3, 4  ;;  %s289_s6 = int_to_ptr.vmem [resolvable:$true] %s288_s6 }
   0x7   :  { %315 = vmatprep.subr.mxu0 %v356_v2  ;;  %317 = vmatprep.mubr.msk.f32.mxu0 %vm357_vm1, %v356_v2  ;;  %v197_v24 = vld [vmem:[%s441_s5] sm:$0xff]  ;;  %s332_s11 = scalar_lea.vmem %s289_s6, 16  ;;  %s336_s12 = scalar_lea.vmem %s289_s6, 32 }
   0x8   :  { %325 = vset.pattern.permute.xlu1 %v358_v4  ;;  %p333_p0 = scmp.ne.s32.totalorder %s289_s6, %s332_s11  ;;  %p337_p1 = scmp.lt.s32.totalorder %s289_s6, %s289_s6 }
   0x9   :  { %201 = vperm.xlu1 %325, %v198_v15   ;;  %p338_p2 = scmp.lt.s32.totalorder %s336_s12, %s332_s11 }
   0xa   :  { %117 = vperm.xlu0 %324, %v114_v5  }
   0xb   :  { %p339_p3 = por %p338_p2, %p337_p1 }
   0xd   :  { %p340_p4 = pnand %p339_p3, %p333_p0 }
  0x85   :  { %v33_v6 = vpop.permute.xlu0 %32 }
  0x88   :  { %v202_v25 = vpop.permute.xlu1 %201 }
  0x89   :  { %v118_v16 = vpop.permute.xlu0 %117 }
  0xd8   :  { %v105_v7 = vpop.f32.mrb[0].mxu0 }
  0xd9   :  { %v106_v8 = vadd.f32 %v105_v7, %v33_v6  ;;  %v309_v9 = vpop.f32.mrb[1].mxu0 }
  0xdb   :  { %v109_v10 = vmul.f32 0.5, %v106_v8 }
  0xdd   :  { %326 = vtanh.f32 %v109_v10 }
  0xe7   :  { %v327_v11 = vpop.eup %326 }
  0xe8   :  { %v111_v12 = vmul.f32 0.5, %v327_v11 }
  0xea   :  { %v112_v13 = vadd.f32 0.5, %v111_v12 }
  0xec   :  { %311 = vmatpush3.msra.mxu1 %v112_v13 }
  0xed   :  { %313 = vmatmul.mubr.msk.f32.vlgmr.msra.gmra.mrb[0].mxu1 %vm35_vm0, %v113_v14 }
 0x1c0   :  { %v189_v17 = vpop.f32.mrb[0].mxu1 }
 0x1c1   :  { %v190_v18 = vadd.f32 %v189_v17, %v118_v16  ;;  %v314_v19 = vpop.f32.mrb[1].mxu1 }
 0x1c3   :  { %v193_v20 = vmul.f32 0.5, %v190_v18 }
 0x1c5   :  { %328 = vtanh.f32 %v193_v20 }
 0x1cf   :  { %v329_v21 = vpop.eup %328 }
 0x1d0   :  { %v195_v22 = vmul.f32 0.5, %v329_v21 }
 0x1d2   :  { %v196_v23 = vadd.f32 0.5, %v195_v22 }
 0x1d4   :  { %316 = vmatpush3.msra.mxu0 %v196_v23 }
 0x1d5   :  { %318 = vmatmul.mubr.msk.f32.vlgmr.msra.gmra.mrb[2].mxu0 %vm35_vm0, %v197_v24 }
 0x2a8   :  { %v273_v26 = vpop.f32.mrb[2].mxu0 }
 0x2a9   :  { %v274_v27 = vadd.f32 %v273_v26, %v202_v25  ;;  %v319_v28 = vpop.f32.mrb[3].mxu0 }
 0x2ab   :  { %v277_v29 = vmul.f32 0.5, %v274_v27 }
 0x2ad   :  { %330 = vtanh.f32 %v277_v29 }
 0x2b7   :  { %v331_v30 = vpop.eup %330 }
 0x2b8   :  { %v279_v31 = vmul.f32 0.5, %v331_v30 }
 0x2ba   :  { %v280_v32 = vadd.f32 0.5, %v279_v31 }
 0x2bc   :  { %281 = vst [vmem:[#allocation2] sm:$0x1] %v280_v32 }
 0x2bd   :  { %343 = shalt.err (!%p340_p4)
}
 0x2be   :  { %s344_s14 = scalar_lea.hbm %s443_s7, 16 }
 0x2bf   :  { %p345_p5 = scmp.ne.s32.totalorder %s443_s7, %s344_s14  ;;  %p348_p6 = scmp.lt.u32.totalorder %s344_s14, %s443_s7 }
 0x2c1   :  { %p350_p7 = pnand %p348_p6, %p345_p5 }
 0x2c3   :  { %353 = shalt.err (!%p350_p7)
}
 0x2c4   :  { %291 = dma.vmem_to_hbm [thread:$0]  %s289_s6, 16, %s443_s7, [#allocation3]  }
 0x2c5   :  { %354 = dma.done.wait [#allocation3], 16  }
 0x2c6   :  { %355 = vsyncadd [#allocation3], 4294967280 }
 0x2c7   :  { %295 = vsyncpa [#allocation3], 1 }

</bundles_post_ra>
